<compile_context>
chip_gen: v7x
topology: tpu7x:2x2x1
jax: 0.10.0
libtpu: 0.0.40
codegen_flags: <defaults>
</compile_context>

<pallas_src>
import functools

import jax
import jax.numpy as jnp
from jax import lax
from jax.experimental import pallas as pl
from jax.experimental.pallas import tpu as pltpu

NUM_GROUPS = 32
EPS = 1e-6


def attn_block_kernel(xq_ref, xkv_ref, scale_ref, shift_ref,
                      wq_ref, bq_ref, wk_ref, bk_ref,
                      wv_ref, bv_ref, wp_ref, bp_ref,
                      out_ref,
                      q_scr, m_scr, l_scr, acc_scr):
    j = pl.program_id(2)
    nj = pl.num_programs(2)
    c = wq_ref.shape[0]
    sm_scale = jnp.float32(float(c) ** -0.5)

    # ---- once per q-tile: normalize, project to q, fold in softmax scale ----
    @pl.when(j == 0)
    def _():
        hq = xq_ref[0] * scale_ref[0] + shift_ref[0]                  # (tq, C) f32
        q = jnp.dot(hq.astype(jnp.bfloat16), wq_ref[...],
                    preferred_element_type=jnp.float32) + bq_ref[...]
        q_scr[...] = (q * sm_scale).astype(jnp.bfloat16)
        m_scr[...] = jnp.full_like(m_scr, -jnp.inf)
        l_scr[...] = jnp.zeros_like(l_scr)
        acc_scr[...] = jnp.zeros_like(acc_scr)

    # ---- per kv-tile: normalize, project to k/v (bf16), flash update ----
    hk = (xkv_ref[0] * scale_ref[0] + shift_ref[0]).astype(jnp.bfloat16)  # (tk, C)
    k = (jnp.dot(hk, wk_ref[...], preferred_element_type=jnp.float32)
         + bk_ref[...]).astype(jnp.bfloat16)                              # (tk, C)
    v = (jnp.dot(hk, wv_ref[...], preferred_element_type=jnp.float32)
         + bv_ref[...]).astype(jnp.bfloat16)                              # (tk, C)

    # scores: contract the channel axis directly (no explicit k.T)
    s = lax.dot_general(q_scr[...], k,
                        dimension_numbers=(((1,), (1,)), ((), ())),
                        preferred_element_type=jnp.float32)               # (tq, tk)

    m_prev = m_scr[...]
    m_new = jnp.maximum(m_prev, jnp.max(s, axis=-1, keepdims=True))
    alpha = jnp.exp(m_prev - m_new)
    p = jnp.exp(s - m_new)
    l_scr[...] = alpha * l_scr[...] + jnp.sum(p, axis=-1, keepdims=True)
    acc_scr[...] = alpha * acc_scr[...] + jnp.dot(
        p.astype(jnp.bfloat16), v, preferred_element_type=jnp.float32)
    m_scr[...] = m_new

    # ---- finalize: 1/l, proj_out, residual ----
    @pl.when(j == nj - 1)
    def _():
        o = acc_scr[...] * pl.reciprocal(l_scr[...], approx=True)
        o = jnp.dot(o.astype(jnp.bfloat16), wp_ref[...],
                    preferred_element_type=jnp.float32) + bp_ref[...]
        out_ref[0] = xq_ref[0] + o


def _pick_tile(hw, requested):
    if requested is not None:
        assert hw % requested == 0 and (requested % 8 == 0 or requested == hw)
        return requested
    for t in (512, 256, 128):
        if hw % t == 0:
            return t
    return hw  # small spatial extents: single full-extent tile


def attn_block(x_nchw, params, *, tile_q=None, tile_k=None):
    """x_nchw: (B, C, H, W) float32.  Returns (B, C, H, W) float32."""
    B, C, H, W = x_nchw.shape
    HW = H * W
    x = jnp.transpose(x_nchw.reshape(B, C, HW), (0, 2, 1)).astype(jnp.float32)  # (B, HW, C)

    # ---- GroupNorm stats in the wrapper (two-pass, matches PyTorch GN) ----
    G = NUM_GROUPS
    cg = C // G
    xg = x.reshape(B, HW, G, cg)
    mean = jnp.mean(xg, axis=(1, 3))                                     # (B, G)
    var = jnp.mean(jnp.square(xg - mean[:, None, :, None]), axis=(1, 3))
    inv = lax.rsqrt(var + jnp.float32(EPS))                              # (B, G)
    mean_c = jnp.repeat(mean, cg, axis=1)                                # (B, C)
    inv_c = jnp.repeat(inv, cg, axis=1)                                  # (B, C)
    gamma = params["gamma"].reshape(1, C).astype(jnp.float32)
    beta = params["beta"].reshape(1, C).astype(jnp.float32)
    gn_scale = (inv_c * gamma)[:, None, :]                               # (B, 1, C)
    gn_shift = (beta - mean_c * inv_c * gamma)[:, None, :]               # (B, 1, C)

    # ---- 1x1 conv weights as (C_in, C_out) bf16 matmul operands ----
    wqT = params["wq"].reshape(C, C).T.astype(jnp.bfloat16)
    wkT = params["wk"].reshape(C, C).T.astype(jnp.bfloat16)
    wvT = params["wv"].reshape(C, C).T.astype(jnp.bfloat16)
    wpT = params["wp"].reshape(C, C).T.astype(jnp.bfloat16)
    bq = params["bq"].reshape(1, C).astype(jnp.float32)
    bk = params["bk"].reshape(1, C).astype(jnp.float32)
    bv = params["bv"].reshape(1, C).astype(jnp.float32)
    bp = params["bp"].reshape(1, C).astype(jnp.float32)

    tq = _pick_tile(HW, tile_q)
    tk = _pick_tile(HW, tile_k)
    grid = (B, HW // tq, HW // tk)

    const2d = lambda b, i, j: (0, 0)
    per_batch = lambda b, i, j: (b, 0, 0)

    cost = pl.CostEstimate(
        flops=int(B * (8 * HW * C * C + 4 * HW * HW * C)),
        transcendentals=int(B * HW * HW),
        bytes_accessed=int(3 * B * HW * C * 4 + 4 * C * C * 2 + 8 * B * C * 4),
    )

    out = pl.pallas_call(
        attn_block_kernel,
        out_shape=jax.ShapeDtypeStruct((B, HW, C), jnp.float32),
        grid_spec=pltpu.PrefetchScalarGridSpec(
            num_scalar_prefetch=0,
            grid=grid,
            in_specs=[
                pl.BlockSpec((1, tq, C), lambda b, i, j: (b, i, 0)),  # x (query tile)
                pl.BlockSpec((1, tk, C), lambda b, i, j: (b, j, 0)),  # x (kv tile)
                pl.BlockSpec((1, 1, C), per_batch),                   # GN scale
                pl.BlockSpec((1, 1, C), per_batch),                   # GN shift
                pl.BlockSpec((C, C), const2d),                        # wq^T (bf16, resident)
                pl.BlockSpec((1, C), const2d),                        # bq
                pl.BlockSpec((C, C), const2d),                        # wk^T
                pl.BlockSpec((1, C), const2d),                        # bk
                pl.BlockSpec((C, C), const2d),                        # wv^T
                pl.BlockSpec((1, C), const2d),                        # bv
                pl.BlockSpec((C, C), const2d),                        # wp^T
                pl.BlockSpec((1, C), const2d),                        # bp
            ],
            out_specs=pl.BlockSpec((1, tq, C), lambda b, i, j: (b, i, 0)),
            scratch_shapes=[
                pltpu.VMEM((tq, C), jnp.bfloat16),   # scaled q tile
                pltpu.VMEM((tq, 1), jnp.float32),    # running max
                pltpu.VMEM((tq, 1), jnp.float32),    # running sum
                pltpu.VMEM((tq, C), jnp.float32),    # output accumulator
            ],
        ),
        compiler_params=pltpu.CompilerParams(
            dimension_semantics=("parallel", "parallel", "arbitrary"),
            vmem_limit_bytes=32 * 1024 * 1024,
        ),
        cost_estimate=cost,
    )(x, x, gn_scale, gn_shift, wqT, bq, wkT, bk, wvT, bv, wpT, bp)

    return jnp.transpose(out, (0, 2, 1)).reshape(B, C, H, W)


def attn_block_ref(x, params):
    """Pure-JAX reference mirroring the PyTorch module (NCHW, f32)."""
    B, C, H, W = x.shape
    cg = C // NUM_GROUPS
    xg = x.reshape(B, NUM_GROUPS, cg, H, W)
    mean = jnp.mean(xg, axis=(2, 3, 4), keepdims=True)
    var = jnp.mean((xg - mean) ** 2, axis=(2, 3, 4), keepdims=True)
    h = ((xg - mean) / jnp.sqrt(var + EPS)).reshape(B, C, H, W)
    h = h * params["gamma"].reshape(1, C, 1, 1) + params["beta"].reshape(1, C, 1, 1)

    def conv1x1(t, w, b):
        return jnp.einsum("bihw,oi->bohw", t, w.reshape(C, C)) + b.reshape(1, C, 1, 1)

    q = conv1x1(h, params["wq"], params["bq"])
    k = conv1x1(h, params["wk"], params["bk"])
    v = conv1x1(h, params["wv"], params["bv"])
    q = q.reshape(B, C, H * W).transpose(0, 2, 1)
    k = k.reshape(B, C, H * W)
    w_ = jnp.einsum("bic,bcj->bij", q, k) * (C ** -0.5)
    w_ = jax.nn.softmax(w_, axis=2)
    v = v.reshape(B, C, H * W)
    o = jnp.einsum("bcj,bij->bci", v, w_).reshape(B, C, H, W)
    o = conv1x1(o, params["wp"], params["bp"])
    return x + o


if __name__ == "__main__":
    def make_params(key, C):
        ks = jax.random.split(key, 10)
        return {
            "gamma": 1.0 + 0.1 * jax.random.normal(ks[0], (C,), jnp.float32),
            "beta": 0.1 * jax.random.normal(ks[1], (C,), jnp.float32),
            "wq": 0.1 * jax.random.normal(ks[2], (C, C, 1, 1), jnp.float32),
            "bq": 0.1 * jax.random.normal(ks[3], (C,), jnp.float32),
            "wk": 0.1 * jax.random.normal(ks[4], (C, C, 1, 1), jnp.float32),
            "bk": 0.1 * jax.random.normal(ks[5], (C,), jnp.float32),
            "wv": 0.1 * jax.random.normal(ks[6], (C, C, 1, 1), jnp.float32),
            "bv": 0.1 * jax.random.normal(ks[7], (C,), jnp.float32),
            "wp": 0.1 * jax.random.normal(ks[8], (C, C, 1, 1), jnp.float32),
            "bp": 0.1 * jax.random.normal(ks[9], (C,), jnp.float32),
        }

    key = jax.random.PRNGKey(0)
    k1, k2, k3, k4 = jax.random.split(key, 4)

    # Case 1: small single-tile path (HW=64 -> full-extent tile).
    B, C, H, W = 2, 32, 8, 8   # C must be divisible by 32 for GroupNorm(32, C)
    params = make_params(k1, C)
    x = jax.random.normal(k2, (B, C, H, W), jnp.float32)
    out = jax.block_until_ready(attn_block(x, params))
    ref = jax.block_until_ready(attn_block_ref(x, params))
    assert out.shape == (B, C, H, W) and out.dtype == jnp.float32
    # bf16 MXU inputs + approx reciprocal -> tolerance loosened vs pure-f32 ref.
    assert jnp.allclose(out, ref, atol=2e-2, rtol=2e-2), float(jnp.max(jnp.abs(out - ref)))

    # Case 2: multi-tile flash path (HW=256, 128-row q/k tiles -> 2x2 kv loop).
    B, C, H, W = 2, 64, 16, 16
    params = make_params(k3, C)
    x = jax.random.normal(k4, (B, C, H, W), jnp.float32)
    out = jax.block_until_ready(attn_block(x, params, tile_q=128, tile_k=128))
    ref = jax.block_until_ready(attn_block_ref(x, params))
    assert jnp.allclose(out, ref, atol=2e-2, rtol=2e-2), float(jnp.max(jnp.abs(out - ref)))

    print("KERNEL_OK")
</pallas_src>

<mosaic_0001>
module attributes {stable_mosaic.version = 11 : i64} {
  func.func @attn_block_kernel(%arg0: i32, %arg1: i32, %arg2: i32, %arg3: memref<1x64x32xf32, #tpu.memory_space<vmem>>, %arg4: memref<1x64x32xf32, #tpu.memory_space<vmem>>, %arg5: memref<1x1x32xf32, #tpu.memory_space<vmem>>, %arg6: memref<1x1x32xf32, #tpu.memory_space<vmem>>, %arg7: memref<32x32xbf16, #tpu.memory_space<vmem>>, %arg8: memref<1x32xf32, #tpu.memory_space<vmem>>, %arg9: memref<32x32xbf16, #tpu.memory_space<vmem>>, %arg10: memref<1x32xf32, #tpu.memory_space<vmem>>, %arg11: memref<32x32xbf16, #tpu.memory_space<vmem>>, %arg12: memref<1x32xf32, #tpu.memory_space<vmem>>, %arg13: memref<32x32xbf16, #tpu.memory_space<vmem>>, %arg14: memref<1x32xf32, #tpu.memory_space<vmem>>, %arg15: memref<1x64x32xf32, #tpu.memory_space<vmem>>, %arg16: memref<64x32xbf16, #tpu.memory_space<vmem>>, %arg17: memref<64x1xf32, #tpu.memory_space<vmem>>, %arg18: memref<64x1xf32, #tpu.memory_space<vmem>>, %arg19: memref<64x32xf32, #tpu.memory_space<vmem>>) attributes {dimension_semantics = [#tpu.dimension_semantics<parallel>, #tpu.dimension_semantics<parallel>, #tpu.dimension_semantics<arbitrary>], iteration_bounds = array<i64: 2, 1, 1>, scalar_prefetch = 0 : i64, scratch_operands = 4 : i64, tpu.core_type = #tpu.core_type<tc>, window_params = [{transform_indices = @transform_0, window_bounds = array<i64: 1, 64, 32>}, {transform_indices = @transform_1, window_bounds = array<i64: 1, 64, 32>}, {transform_indices = @transform_2, window_bounds = array<i64: 1, 1, 32>}, {transform_indices = @transform_3, window_bounds = array<i64: 1, 1, 32>}, {pipeline_mode = #tpu.pipeline_mode<synchronous>, transform_indices = @transform_4, window_bounds = array<i64: 32, 32>}, {pipeline_mode = #tpu.pipeline_mode<synchronous>, transform_indices = @transform_5, window_bounds = array<i64: 1, 32>}, {pipeline_mode = #tpu.pipeline_mode<synchronous>, transform_indices = @transform_6, window_bounds = array<i64: 32, 32>}, {pipeline_mode = #tpu.pipeline_mode<synchronous>, transform_indices = @transform_7, window_bounds = array<i64: 1, 32>}, {pipeline_mode = #tpu.pipeline_mode<synchronous>, transform_indices = @transform_8, window_bounds = array<i64: 32, 32>}, {pipeline_mode = #tpu.pipeline_mode<synchronous>, transform_indices = @transform_9, window_bounds = array<i64: 1, 32>}, {pipeline_mode = #tpu.pipeline_mode<synchronous>, transform_indices = @transform_10, window_bounds = array<i64: 32, 32>}, {pipeline_mode = #tpu.pipeline_mode<synchronous>, transform_indices = @transform_11, window_bounds = array<i64: 1, 32>}, {transform_indices = @transform_12, window_bounds = array<i64: 1, 64, 32>}]} {
    %c0_i32 = arith.constant 0 : i32
    %0 = arith.cmpi eq, %arg2, %c0_i32 : i32
    %1 = arith.extui %0 : i1 to i32
    %cst = arith.constant 0.176776692 : f32
    %c0_i32_0 = arith.constant 0 : i32
    %2 = arith.cmpi ne, %1, %c0_i32_0 : i32
    scf.if %2 {
      %c0_39 = arith.constant 0 : index
      %c0_40 = arith.constant 0 : index
      %c0_41 = arith.constant 0 : index
      %54 = vector.load %arg3[%c0_39, %c0_40, %c0_41] : memref<1x64x32xf32, #tpu.memory_space<vmem>>, vector<1x64x32xf32>
      %55 = vector.shape_cast %54 : vector<1x64x32xf32> to vector<64x32xf32>
      %c0_42 = arith.constant 0 : index
      %c0_43 = arith.constant 0 : index
      %c0_44 = arith.constant 0 : index
      %56 = vector.load %arg5[%c0_42, %c0_43, %c0_44] : memref<1x1x32xf32, #tpu.memory_space<vmem>>, vector<1x1x32xf32>
      %57 = vector.shape_cast %56 : vector<1x1x32xf32> to vector<1x32xf32>
      %58 = vector.broadcast %57 : vector<1x32xf32> to vector<64x32xf32>
      %59 = arith.mulf %55, %58 : vector<64x32xf32>
      %c0_45 = arith.constant 0 : index
      %c0_46 = arith.constant 0 : index
      %c0_47 = arith.constant 0 : index
      %60 = vector.load %arg6[%c0_45, %c0_46, %c0_47] : memref<1x1x32xf32, #tpu.memory_space<vmem>>, vector<1x1x32xf32>
      %61 = vector.shape_cast %60 : vector<1x1x32xf32> to vector<1x32xf32>
      %62 = vector.broadcast %61 : vector<1x32xf32> to vector<64x32xf32>
      %63 = arith.addf %59, %62 : vector<64x32xf32>
      %64 = arith.truncf %63 : vector<64x32xf32> to vector<64x32xbf16>
      %c0_48 = arith.constant 0 : index
      %c0_49 = arith.constant 0 : index
      %65 = vector.load %arg7[%c0_48, %c0_49] : memref<32x32xbf16, #tpu.memory_space<vmem>>, vector<32x32xbf16>
      %cst_50 = arith.constant dense<0.000000e+00> : vector<64x32xf32>
      %66 = tpu.matmul %64, %65, %cst_50 {dimension_numbers = #tpu.dot_dimension_numbers<[1], [0], [0], [1], [0, 0, 1, 1], [], []>} : vector<64x32xbf16>, vector<32x32xbf16>, vector<64x32xf32> -> vector<64x32xf32>
      %c0_51 = arith.constant 0 : index
      %c0_52 = arith.constant 0 : index
      %67 = vector.load %arg8[%c0_51, %c0_52] : memref<1x32xf32, #tpu.memory_space<vmem>>, vector<1x32xf32>
      %68 = vector.broadcast %67 : vector<1x32xf32> to vector<64x32xf32>
      %69 = arith.addf %66, %68 : vector<64x32xf32>
      %70 = vector.broadcast %cst : f32 to vector<64x32xf32>
      %71 = arith.mulf %69, %70 : vector<64x32xf32>
      %72 = arith.truncf %71 : vector<64x32xf32> to vector<64x32xbf16>
      %c0_53 = arith.constant 0 : index
      %c0_54 = arith.constant 0 : index
      %73 = vector.load %arg16[%c0_53, %c0_54] : memref<64x32xbf16, #tpu.memory_space<vmem>>, vector<64x32xbf16>
      tpu.vector_store %arg16[%c0_53, %c0_54], %72 {strides = array<i32>} : memref<64x32xbf16, #tpu.memory_space<vmem>>, vector<64x32xbf16>,
      %cst_55 = arith.constant 0xFF800000 : f32
      %74 = vector.broadcast %cst_55 : f32 to vector<64x1xf32>
      %c0_56 = arith.constant 0 : index
      %c0_57 = arith.constant 0 : index
      %75 = vector.load %arg17[%c0_56, %c0_57] : memref<64x1xf32, #tpu.memory_space<vmem>>, vector<64x1xf32>
      tpu.vector_store %arg17[%c0_56, %c0_57], %74 {strides = array<i32>} : memref<64x1xf32, #tpu.memory_space<vmem>>, vector<64x1xf32>,
      %cst_58 = arith.constant 0.000000e+00 : f32
      %76 = vector.broadcast %cst_58 : f32 to vector<64x1xf32>
      %c0_59 = arith.constant 0 : index
      %c0_60 = arith.constant 0 : index
      %77 = vector.load %arg18[%c0_59, %c0_60] : memref<64x1xf32, #tpu.memory_space<vmem>>, vector<64x1xf32>
      tpu.vector_store %arg18[%c0_59, %c0_60], %76 {strides = array<i32>} : memref<64x1xf32, #tpu.memory_space<vmem>>, vector<64x1xf32>,
      %cst_61 = arith.constant 0.000000e+00 : f32
      %78 = vector.broadcast %cst_61 : f32 to vector<64x32xf32>
      %c0_62 = arith.constant 0 : index
      %c0_63 = arith.constant 0 : index
      %79 = vector.load %arg19[%c0_62, %c0_63] : memref<64x32xf32, #tpu.memory_space<vmem>>, vector<64x32xf32>
      tpu.vector_store %arg19[%c0_62, %c0_63], %78 {strides = array<i32>} : memref<64x32xf32, #tpu.memory_space<vmem>>, vector<64x32xf32>,
    } else {
    }
    %c0 = arith.constant 0 : index
    %c0_1 = arith.constant 0 : index
    %c0_2 = arith.constant 0 : index
    %3 = vector.load %arg4[%c0, %c0_1, %c0_2] : memref<1x64x32xf32, #tpu.memory_space<vmem>>, vector<1x64x32xf32>
    %4 = vector.shape_cast %3 : vector<1x64x32xf32> to vector<64x32xf32>
    %c0_3 = arith.constant 0 : index
    %c0_4 = arith.constant 0 : index
    %c0_5 = arith.constant 0 : index
    %5 = vector.load %arg5[%c0_3, %c0_4, %c0_5] : memref<1x1x32xf32, #tpu.memory_space<vmem>>, vector<1x1x32xf32>
    %6 = vector.shape_cast %5 : vector<1x1x32xf32> to vector<1x32xf32>
    %7 = vector.broadcast %6 : vector<1x32xf32> to vector<64x32xf32>
    %8 = arith.mulf %4, %7 : vector<64x32xf32>
    %c0_6 = arith.constant 0 : index
    %c0_7 = arith.constant 0 : index
    %c0_8 = arith.constant 0 : index
    %9 = vector.load %arg6[%c0_6, %c0_7, %c0_8] : memref<1x1x32xf32, #tpu.memory_space<vmem>>, vector<1x1x32xf32>
    %10 = vector.shape_cast %9 : vector<1x1x32xf32> to vector<1x32xf32>
    %11 = vector.broadcast %10 : vector<1x32xf32> to vector<64x32xf32>
    %12 = arith.addf %8, %11 : vector<64x32xf32>
    %13 = arith.truncf %12 : vector<64x32xf32> to vector<64x32xbf16>
    %c0_9 = arith.constant 0 : index
    %c0_10 = arith.constant 0 : index
    %14 = vector.load %arg9[%c0_9, %c0_10] : memref<32x32xbf16, #tpu.memory_space<vmem>>, vector<32x32xbf16>
    %cst_11 = arith.constant dense<0.000000e+00> : vector<64x32xf32>
    %15 = tpu.matmul %13, %14, %cst_11 {dimension_numbers = #tpu.dot_dimension_numbers<[1], [0], [0], [1], [0, 0, 1, 1], [], []>} : vector<64x32xbf16>, vector<32x32xbf16>, vector<64x32xf32> -> vector<64x32xf32>
    %c0_12 = arith.constant 0 : index
    %c0_13 = arith.constant 0 : index
    %16 = vector.load %arg10[%c0_12, %c0_13] : memref<1x32xf32, #tpu.memory_space<vmem>>, vector<1x32xf32>
    %17 = vector.broadcast %16 : vector<1x32xf32> to vector<64x32xf32>
    %18 = arith.addf %15, %17 : vector<64x32xf32>
    %19 = arith.truncf %18 : vector<64x32xf32> to vector<64x32xbf16>
    %c0_14 = arith.constant 0 : index
    %c0_15 = arith.constant 0 : index
    %20 = vector.load %arg11[%c0_14, %c0_15] : memref<32x32xbf16, #tpu.memory_space<vmem>>, vector<32x32xbf16>
    %cst_16 = arith.constant dense<0.000000e+00> : vector<64x32xf32>
    %21 = tpu.matmul %13, %20, %cst_16 {dimension_numbers = #tpu.dot_dimension_numbers<[1], [0], [0], [1], [0, 0, 1, 1], [], []>} : vector<64x32xbf16>, vector<32x32xbf16>, vector<64x32xf32> -> vector<64x32xf32>
    %c0_17 = arith.constant 0 : index
    %c0_18 = arith.constant 0 : index
    %22 = vector.load %arg12[%c0_17, %c0_18] : memref<1x32xf32, #tpu.memory_space<vmem>>, vector<1x32xf32>
    %23 = vector.broadcast %22 : vector<1x32xf32> to vector<64x32xf32>
    %24 = arith.addf %21, %23 : vector<64x32xf32>
    %25 = arith.truncf %24 : vector<64x32xf32> to vector<64x32xbf16>
    %c0_19 = arith.constant 0 : index
    %c0_20 = arith.constant 0 : index
    %26 = vector.load %arg16[%c0_19, %c0_20] : memref<64x32xbf16, #tpu.memory_space<vmem>>, vector<64x32xbf16>
    %cst_21 = arith.constant dense<0.000000e+00> : vector<64x64xf32>
    %27 = tpu.matmul %26, %19, %cst_21 {dimension_numbers = #tpu.dot_dimension_numbers<[1], [1], [0], [0], [0, 0, 1, 0], [], []>} : vector<64x32xbf16>, vector<64x32xbf16>, vector<64x64xf32> -> vector<64x64xf32>
    %c0_22 = arith.constant 0 : index
    %c0_23 = arith.constant 0 : index
    %28 = vector.load %arg17[%c0_22, %c0_23] : memref<64x1xf32, #tpu.memory_space<vmem>>, vector<64x1xf32>
    %cst_24 = arith.constant dense<0xFF800000> : vector<64xf32>
    %29 = vector.multi_reduction <maximumf>, %27, %cst_24 [1] : vector<64x64xf32> to vector<64xf32>
    %30 = vector.shape_cast %29 : vector<64xf32> to vector<64x1xf32>
    %31 = arith.maximumf %28, %30 : vector<64x1xf32>
    %32 = arith.subf %28, %31 : vector<64x1xf32>
    %33 = math.exp %32 : vector<64x1xf32>
    %34 = vector.broadcast %31 : vector<64x1xf32> to vector<64x64xf32>
    %35 = arith.subf %27, %34 : vector<64x64xf32>
    %36 = math.exp %35 : vector<64x64xf32>
    %c0_25 = arith.constant 0 : index
    %c0_26 = arith.constant 0 : index
    %37 = vector.load %arg18[%c0_25, %c0_26] : memref<64x1xf32, #tpu.memory_space<vmem>>, vector<64x1xf32>
    %38 = arith.mulf %33, %37 : vector<64x1xf32>
    %cst_27 = arith.constant dense<0.000000e+00> : vector<64xf32>
    %39 = vector.multi_reduction <add>, %36, %cst_27 [1] : vector<64x64xf32> to vector<64xf32>
    %40 = vector.shape_cast %39 : vector<64xf32> to vector<64x1xf32>
    %41 = arith.addf %38, %40 : vector<64x1xf32>
    %c0_28 = arith.constant 0 : index
    %c0_29 = arith.constant 0 : index
    %42 = vector.load %arg18[%c0_28, %c0_29] : memref<64x1xf32, #tpu.memory_space<vmem>>, vector<64x1xf32>
    tpu.vector_store %arg18[%c0_28, %c0_29], %41 {strides = array<i32>} : memref<64x1xf32, #tpu.memory_space<vmem>>, vector<64x1xf32>,
    %c0_30 = arith.constant 0 : index
    %c0_31 = arith.constant 0 : index
    %43 = vector.load %arg19[%c0_30, %c0_31] : memref<64x32xf32, #tpu.memory_space<vmem>>, vector<64x32xf32>
    %44 = vector.broadcast %33 : vector<64x1xf32> to vector<64x32xf32>
    %45 = arith.mulf %44, %43 : vector<64x32xf32>
    %46 = arith.truncf %36 : vector<64x64xf32> to vector<64x64xbf16>
    %cst_32 = arith.constant dense<0.000000e+00> : vector<64x32xf32>
    %47 = tpu.matmul %46, %25, %cst_32 {dimension_numbers = #tpu.dot_dimension_numbers<[1], [0], [0], [1], [0, 0, 1, 1], [], []>} : vector<64x64xbf16>, vector<64x32xbf16>, vector<64x32xf32> -> vector<64x32xf32>
    %48 = arith.addf %45, %47 : vector<64x32xf32>
    %c0_33 = arith.constant 0 : index
    %c0_34 = arith.constant 0 : index
    %49 = vector.load %arg19[%c0_33, %c0_34] : memref<64x32xf32, #tpu.memory_space<vmem>>, vector<64x32xf32>
    tpu.vector_store %arg19[%c0_33, %c0_34], %48 {strides = array<i32>} : memref<64x32xf32, #tpu.memory_space<vmem>>, vector<64x32xf32>,
    %c0_35 = arith.constant 0 : index
    %c0_36 = arith.constant 0 : index
    %50 = vector.load %arg17[%c0_35, %c0_36] : memref<64x1xf32, #tpu.memory_space<vmem>>, vector<64x1xf32>
    tpu.vector_store %arg17[%c0_35, %c0_36], %31 {strides = array<i32>} : memref<64x1xf32, #tpu.memory_space<vmem>>, vector<64x1xf32>,
    %c0_i32_37 = arith.constant 0 : i32
    %51 = arith.cmpi eq, %arg2, %c0_i32_37 : i32
    %52 = arith.extui %51 : i1 to i32
    %c0_i32_38 = arith.constant 0 : i32
    %53 = arith.cmpi ne, %52, %c0_i32_38 : i32
    scf.if %53 {
      %c0_39 = arith.constant 0 : index
      %c0_40 = arith.constant 0 : index
      %54 = vector.load %arg19[%c0_39, %c0_40] : memref<64x32xf32, #tpu.memory_space<vmem>>, vector<64x32xf32>
      %c0_41 = arith.constant 0 : index
      %c0_42 = arith.constant 0 : index
      %55 = vector.load %arg18[%c0_41, %c0_42] : memref<64x1xf32, #tpu.memory_space<vmem>>, vector<64x1xf32>
      %56 = tpu.reciprocal %55 {approx = true} : vector<64x1xf32> -> vector<64x1xf32>
      %57 = vector.broadcast %56 : vector<64x1xf32> to vector<64x32xf32>
      %58 = arith.mulf %54, %57 : vector<64x32xf32>
      %59 = arith.truncf %58 : vector<64x32xf32> to vector<64x32xbf16>
      %c0_43 = arith.constant 0 : index
      %c0_44 = arith.constant 0 : index
      %60 = vector.load %arg13[%c0_43, %c0_44] : memref<32x32xbf16, #tpu.memory_space<vmem>>, vector<32x32xbf16>
      %cst_45 = arith.constant dense<0.000000e+00> : vector<64x32xf32>
      %61 = tpu.matmul %59, %60, %cst_45 {dimension_numbers = #tpu.dot_dimension_numbers<[1], [0], [0], [1], [0, 0, 1, 1], [], []>} : vector<64x32xbf16>, vector<32x32xbf16>, vector<64x32xf32> -> vector<64x32xf32>
      %c0_46 = arith.constant 0 : index
      %c0_47 = arith.constant 0 : index
      %62 = vector.load %arg14[%c0_46, %c0_47] : memref<1x32xf32, #tpu.memory_space<vmem>>, vector<1x32xf32>
      %63 = vector.broadcast %62 : vector<1x32xf32> to vector<64x32xf32>
      %64 = arith.addf %61, %63 : vector<64x32xf32>
      %c0_48 = arith.constant 0 : index
      %c0_49 = arith.constant 0 : index
      %c0_50 = arith.constant 0 : index
      %65 = vector.load %arg3[%c0_48, %c0_49, %c0_50] : memref<1x64x32xf32, #tpu.memory_space<vmem>>, vector<1x64x32xf32>
      %66 = vector.shape_cast %65 : vector<1x64x32xf32> to vector<64x32xf32>
      %67 = arith.addf %66, %64 : vector<64x32xf32>
      %c0_51 = arith.constant 0 : index
      %c0_52 = arith.constant 0 : index
      %c0_53 = arith.constant 0 : index
      %68 = vector.load %arg15[%c0_51, %c0_52, %c0_53] : memref<1x64x32xf32, #tpu.memory_space<vmem>>, vector<1x64x32xf32>
      %69 = vector.shape_cast %68 : vector<1x64x32xf32> to vector<64x32xf32>
      %70 = vector.shape_cast %67 : vector<64x32xf32> to vector<1x64x32xf32>
      tpu.vector_store %arg15[%c0_51, %c0_52, %c0_53], %70 {strides = array<i32>} : memref<1x64x32xf32, #tpu.memory_space<vmem>>, vector<1x64x32xf32>,
    } else {
    }
    return
  }
  func.func @transform_0(%arg0: i32, %arg1: i32, %arg2: i32) -> (i32, i32, i32) {
    %c0_i32 = arith.constant 0 : i32
    %c0_i32_0 = arith.constant 0 : i32
    return %arg0, %arg1, %c0_i32 : i32, i32, i32
  }
  func.func @transform_1(%arg0: i32, %arg1: i32, %arg2: i32) -> (i32, i32, i32) {
    %c0_i32 = arith.constant 0 : i32
    %c0_i32_0 = arith.constant 0 : i32
    return %arg0, %arg2, %c0_i32 : i32, i32, i32
  }
  func.func @transform_2(%arg0: i32, %arg1: i32, %arg2: i32) -> (i32, i32, i32) {
    %c0_i32 = arith.constant 0 : i32
    %c0_i32_0 = arith.constant 0 : i32
    %c0_i32_1 = arith.constant 0 : i32
    return %arg0, %c0_i32, %c0_i32_0 : i32, i32, i32
  }
  func.func @transform_3(%arg0: i32, %arg1: i32, %arg2: i32) -> (i32, i32, i32) {
    %c0_i32 = arith.constant 0 : i32
    %c0_i32_0 = arith.constant 0 : i32
    %c0_i32_1 = arith.constant 0 : i32
    return %arg0, %c0_i32, %c0_i32_0 : i32, i32, i32
  }
  func.func @transform_4(%arg0: i32, %arg1: i32, %arg2: i32) -> (i32, i32) {
    %c0_i32 = arith.constant 0 : i32
    %c0_i32_0 = arith.constant 0 : i32
    %c0_i32_1 = arith.constant 0 : i32
    return %c0_i32, %c0_i32_0 : i32, i32
  }
  func.func @transform_5(%arg0: i32, %arg1: i32, %arg2: i32) -> (i32, i32) {
    %c0_i32 = arith.constant 0 : i32
    %c0_i32_0 = arith.constant 0 : i32
    %c0_i32_1 = arith.constant 0 : i32
    return %c0_i32, %c0_i32_0 : i32, i32
  }
  func.func @transform_6(%arg0: i32, %arg1: i32, %arg2: i32) -> (i32, i32) {
    %c0_i32 = arith.constant 0 : i32
    %c0_i32_0 = arith.constant 0 : i32
    %c0_i32_1 = arith.constant 0 : i32
    return %c0_i32, %c0_i32_0 : i32, i32
  }
  func.func @transform_7(%arg0: i32, %arg1: i32, %arg2: i32) -> (i32, i32) {
    %c0_i32 = arith.constant 0 : i32
    %c0_i32_0 = arith.constant 0 : i32
    %c0_i32_1 = arith.constant 0 : i32
    return %c0_i32, %c0_i32_0 : i32, i32
  }
  func.func @transform_8(%arg0: i32, %arg1: i32, %arg2: i32) -> (i32, i32) {
    %c0_i32 = arith.constant 0 : i32
    %c0_i32_0 = arith.constant 0 : i32
    %c0_i32_1 = arith.constant 0 : i32
    return %c0_i32, %c0_i32_0 : i32, i32
  }
  func.func @transform_9(%arg0: i32, %arg1: i32, %arg2: i32) -> (i32, i32) {
    %c0_i32 = arith.constant 0 : i32
    %c0_i32_0 = arith.constant 0 : i32
    %c0_i32_1 = arith.constant 0 : i32
    return %c0_i32, %c0_i32_0 : i32, i32
  }
  func.func @transform_10(%arg0: i32, %arg1: i32, %arg2: i32) -> (i32, i32) {
    %c0_i32 = arith.constant 0 : i32
    %c0_i32_0 = arith.constant 0 : i32
    %c0_i32_1 = arith.constant 0 : i32
    return %c0_i32, %c0_i32_0 : i32, i32
  }
  func.func @transform_11(%arg0: i32, %arg1: i32, %arg2: i32) -> (i32, i32) {
    %c0_i32 = arith.constant 0 : i32
    %c0_i32_0 = arith.constant 0 : i32
    %c0_i32_1 = arith.constant 0 : i32
    return %c0_i32, %c0_i32_0 : i32, i32
  }
  func.func @transform_12(%arg0: i32, %arg1: i32, %arg2: i32) -> (i32, i32, i32) {
    %c0_i32 = arith.constant 0 : i32
    %c0_i32_0 = arith.constant 0 : i32
    return %arg0, %arg1, %c0_i32 : i32, i32, i32
  }
}

</mosaic_0001>

<bundles_post_ra>
// kernel: tpu_custom_call.1
= control target key start
LH: loop header
LB: loop body
LE: loop exit
PB: predicated region body
PF: predicated region fallthrough
CT: control target
= control target key end

     0   :  { %s2086_s21 = smov 0   ;;  %s2088_s22 = smov 0   ;;  %s2473_s0 = inlined_call_operand.vmem [shape: f32[2,64,32], index: 0, kind: input, shape index: {}]   ;;  %s2474_s1 = inlined_call_operand.vmem [shape: f32[2,64,32], index: 1, kind: input, shape index: {}]   ;;  %s2475_s2 = inlined_call_operand.vmem [shape: f32[2,1,32], index: 2, kind: input, shape index: {}]   ;;  %s2476_s3 = inlined_call_operand.vmem [shape: f32[2,1,32], index: 3, kind: input, shape index: {}]   ;;  %s2477_s4 = inlined_call_operand.vmem [shape: bf16[32,32], index: 4, kind: input, shape index: {}]   ;;  %s2478_s5 = inlined_call_operand.vmem [shape: f32[1,32], index: 5, kind: input, shape index: {}]   ;;  %s2479_s6 = inlined_call_operand.vmem [shape: bf16[32,32], index: 6, kind: input, shape index: {}]   ;;  %s2480_s7 = inlined_call_operand.vmem [shape: f32[1,32], index: 7, kind: input, shape index: {}]   ;;  %s2481_s8 = inlined_call_operand.vmem [shape: bf16[32,32], index: 8, kind: input, shape index: {}]   ;;  %s2482_s9 = inlined_call_operand.vmem [shape: f32[1,32], index: 9, kind: input, shape index: {}]   ;;  %s2483_s10 = inlined_call_operand.vmem [shape: bf16[32,32], index: 10, kind: input, shape index: {}]   ;;  %s2484_s11 = inlined_call_operand.vmem [shape: f32[1,32], index: 11, kind: input, shape index: {}]   ;;  %s2485_s12 = inlined_call_operand.vmem [shape: f32[2,64,32], index: 12, kind: output, shape index: {}]  }
   0x1   :  { %s2090_s23 = smov 0  }
   0x2 LB: > { %s41_s24 = sadd.s32 1, %s2012_s22  ;;  %p1725_p0 = scmp.ge.s32.totalorder %s2016_s23, 1  ;;  %s2016_s23 = sphi %s2090_s23, %s22_s23   ;;  %s2012_s22 = sphi %s2088_s22, %s2487_s22   ;;  %s2008_s21 = sphi %s2086_s21, %s2486_s21  }
   0x3   : > { %p43_p1 = scmp.ge.s32.totalorder %s41_s24, 2  ;;  %p423_p2 = scmp.lt.s32.totalorder %s2016_s23, 3 }
   0x5   : > { %s2489_s24 = smov (%p43_p1, %s41_s24), 0  ;;  %p424_p3 = pnand %p1725_p0, %p423_p2 }
   0x6   : > { %v1934_v0 = vld [vmem:[%s2477_s4] sm:$0xff] (!%p424_p3)   ;;  %p489_p4 = scmp.lt.s32.totalorder (!%p424_p3), %s2008_s21, 1  ;;  %v1935_v1 = vld [vmem:[%s2477_s4 + $0x8] sm:$0xff] (!%p424_p3)   ;;  %vm594_vm0 = vcmask (!%p424_p3), 261120   ;;  %vm688_vm1 = vcmask (!%p424_p3), 7168   ;;  %vm1053_vm2 = vcmask (!%p424_p3), 523264  }
   0x7   : > { %427 = sbr.rel (%p424_p3) target bundleno = 1326 (0x52e), region = 68  ;;  %1897 = vmatprep.subr.bf16.mxu1 (!%p424_p3), %v1934_v0  ;;  %1817 = vmatprep.subr.bf16.mxu0 (!%p424_p3), %v1934_v0  ;;  %v1936_v2 = vld [vmem:[%s2479_s6] sm:$0xff] (!%p424_p3)   ;;  %v1937_v26 = vld [vmem:[%s2479_s6 + $0x8] sm:$0xff] (!%p424_p3)  }
   0x8   : > { %1899 = vmatpush3.bf16.msra.mxu1 (!%p424_p3), %v1934_v0  ;;  %1818 = vmatpush3.bf16.msra.mxu0 (!%p424_p3), %v1934_v0  ;;  %v1734_v62 = vld [vmem:[%s2478_s5] ss:$0 sm:$0xff] (!%p424_p3) }
   0x9   : > { %1898 = vmatprep.subr.bf16.mxu1 (!%p424_p3), %v1935_v1  ;;  %1819 = vmatprep.subr.bf16.mxu0 (!%p424_p3), %v1935_v1 }
   0xc   : > { %1900 = vmatpush3.bf16.msra.mxu1 (!%p424_p3), %v1935_v1  ;;  %1820 = vmatpush3.bf16.msra.mxu0 (!%p424_p3), %v1935_v1 }
   0xd   : > { %1829 = vmatprep.subr.bf16.mxu1 (!%p424_p3), %v1936_v2 }
   0xe   : > { %s2491_s21 = smov (!%p489_p4, %s2008_s21), 1 }
   0xf   : > { %s2110_s29 = sshll.u32 %s2491_s21, 6  ;;  %s510_s14 = scalar_lea.vmem %s2475_s2, %s2491_s21 }
  0x10   : > { %s2122_s19 = scalar_lea.vmem %s2473_s0, %s2110_s29  ;;  %s513_s26 = scalar_lea.vmem %s2476_s3, %s2491_s21  ;;  %v1732_v3 = vld [vmem:[%s510_s14] ss:$0 sm:$0xff] }
  0x11   : > { %v533_v4 = vld [vmem:[%s2122_s19 + $0x20] sm:$0xff]  ;;  %v534_v5 = vld [vmem:[%s2122_s19 + $0x28] sm:$0xff]  ;;  %s2135_s30 = scalar_lea.vmem %s2474_s1, %s2110_s29  ;;  %v535_v9 = vld [vmem:[%s2122_s19 + $0x30] sm:$0xff]  ;;  %s2438_s20 = scalar_lea.vmem %s2485_s12, %s2110_s29 }
  0x12   : > { %v2129_v6 = vld [vmem:[%s513_s26] ss:$0 sm:$0xff]  ;;  %v548_v7 = vmul.f32 %v1732_v3, %v533_v4  ;;  %v549_v8 = vmul.f32 %v1732_v3, %v534_v5  ;;  %v536_v10 = vld [vmem:[%s2122_s19 + $0x38] sm:$0xff]  ;;  %v550_v12 = vmul.f32 %v1732_v3, %v535_v9  ;;  %v714_v14 = vld [vmem:[%s2135_s30 + $0x8] sm:$0xff] }
  0x13   : > { %v713_v11 = vld [vmem:[%s2135_s30] sm:$0xff]  ;;  %v551_v13 = vmul.f32 %v1732_v3, %v536_v10  ;;  %v715_v16 = vld [vmem:[%s2135_s30 + $0x10] sm:$0xff]  ;;  %v716_v17 = vld [vmem:[%s2135_s30 + $0x18] sm:$0xff]  ;;  %v729_v20 = vmul.f32 %v1732_v3, %v714_v14 }
  0x14   : > { %v728_v15 = vmul.f32 %v1732_v3, %v713_v11  ;;  %v563_v18 = vadd.f32 %v2129_v6, %v548_v7  ;;  %v564_v19 = vadd.f32 %v2129_v6, %v549_v8  ;;  %v730_v21 = vmul.f32 %v1732_v3, %v715_v16  ;;  %v717_v22 = vld [vmem:[%s2135_s30 + $0x20] sm:$0xff]  ;;  %v718_v23 = vld [vmem:[%s2135_s30 + $0x28] sm:$0xff]  ;;  %v531_v34 = vld [vmem:[%s2122_s19 + $0x10] sm:$0xff] }
  0x15   : > { %v565_v24 = vadd.f32 %v2129_v6, %v550_v12  ;;  %v566_v25 = vadd.f32 %v2129_v6, %v551_v13  ;;  %v731_v28 = vmul.f32 %v1732_v3, %v716_v17  ;;  %v529_v29 = vld [vmem:[%s2122_s19] sm:$0xff]  ;;  %v744_v31 = vadd.f32 %v2129_v6, %v729_v20  ;;  %v530_v33 = vld [vmem:[%s2122_s19 + $0x8] sm:$0xff]  ;;  %v532_v39 = vld [vmem:[%s2122_s19 + $0x18] sm:$0xff] }
  0x16   : > { %v743_v27 = vadd.f32 %v2129_v6, %v728_v15  ;;  %v569_v30 = vpack.c.bf16 %v564_v19, %v563_v18  ;;  %v732_v32 = vmul.f32 %v1732_v3, %v717_v22  ;;  %v733_v36 = vmul.f32 %v1732_v3, %v718_v23  ;;  %v719_v43 = vld [vmem:[%s2135_s30 + $0x30] sm:$0xff]  ;;  %v720_v46 = vld [vmem:[%s2135_s30 + $0x38] sm:$0xff]  ;;  %v1743_v14 = vld [vmem:[%s2480_s7] ss:$0 sm:$0xff] }
  0x17   : > { %v570_v35 = vpack.c.bf16 %v566_v25, %v565_v24  ;;  %v544_v38 = vmul.f32 %v1732_v3, %v529_v29  ;;  %v745_v40 = vadd.f32 %v2129_v6, %v730_v21  ;;  %v746_v41 = vadd.f32 %v2129_v6, %v731_v28 }
  0x18   : > { %1825 = vmatprep.mubr.msk.bf16.mxu1 %vm594_vm0, %v569_v30  ;;  %v751_v37 = vpack.c.bf16 %v744_v31, %v743_v27  ;;  %v747_v42 = vadd.f32 %v2129_v6, %v732_v32  ;;  %v545_v44 = vmul.f32 %v1732_v3, %v530_v33  ;;  %v748_v45 = vadd.f32 %v2129_v6, %v733_v36 }
  0x19   : > { %1826 = vmatmul.mubr.msk.bf16.vlgmr.msra.gmra.mrb[0].mxu1 %vm594_vm0, %v570_v35  ;;  %v559_v47 = vadd.f32 %v2129_v6, %v544_v38  ;;  %v546_v48 = vmul.f32 %v1732_v3, %v531_v34  ;;  %v547_v50 = vmul.f32 %v1732_v3, %v532_v39  ;;  %v734_v51 = vmul.f32 %v1732_v3, %v719_v43 }
  0x1a   : > { %1830 = vmatpush3.bf16.msra.mxu1 %v1936_v2  ;;  %1833 = vmatprep.mubr.msk.bf16.mxu1 %vm594_vm0, %v751_v37  ;;  %v560_v49 = vadd.f32 %v2129_v6, %v545_v44  ;;  %v2170_v53 = vpack.c.bf16 %v746_v41, %v745_v40  ;;  %v735_v54 = vmul.f32 %v1732_v3, %v720_v46 }
  0x1b   : > { %1831 = vmatprep.subr.bf16.mxu1 %v1937_v26  ;;  %v561_v52 = vadd.f32 %v2129_v6, %v546_v48  ;;  %v562_v56 = vadd.f32 %v2129_v6, %v547_v50  ;;  %v2173_v57 = vpack.c.bf16 %v748_v45, %v747_v42  ;;  %v749_v59 = vadd.f32 %v2129_v6, %v734_v51 }
  0x1c   : > { %v567_v55 = vpack.c.bf16 %v560_v49, %v559_v47  ;;  %v750_v60 = vadd.f32 %v2129_v6, %v735_v54 }
  0x1d   : > { %v568_v58 = vpack.c.bf16 %v562_v56, %v561_v52 }
  0x1e   : > { %1832 = vmatpush3.bf16.msra.mxu1 %v1937_v26  ;;  %1821 = vmatprep.mubr.msk.bf16.mxu0 %vm594_vm0, %v567_v55  ;;  %v2184_v61 = vpack.c.bf16 %v750_v60, %v749_v59  ;;  %v1939_v59 = vld [vmem:[%s2481_s8 + $0x8] sm:$0xff]   ;;  %v2018_v60 = vmov -inf  }
  0x1f   : > { %1822 = vmatmul.mubr.msk.bf16.vlgmr.msra.gmra.mrb[0].mxu0 %vm594_vm0, %v568_v58  ;;  %v1938_v58 = vld [vmem:[%s2481_s8] sm:$0xff]   ;;  %691 = vst.msk [vmem:[#allocation3 + $0x10] sm:$0xff] %vm688_vm1, %v2018_v60  ;;  %689 = vst.msk [vmem:[#allocation3] sm:$0xff] %vm688_vm1, %v2018_v60 }
  0x20   : > { %1845 = vmatprep.mubr.msk.bf16.mxu0 %vm594_vm0, %v751_v37  ;;  %690 = vst.msk [vmem:[#allocation3 + $0x8] sm:$0xff] %vm688_vm1, %v2018_v60  ;;  %692 = vst.msk [vmem:[#allocation3 + $0x18] sm:$0xff] %vm688_vm1, %v2018_v60  ;;  %1841 = vmatprep.subr.bf16.mxu0 %v1938_v58 }
  0x21   : > { %1834 = vmatmul.mubr.msk.bf16.vlgmr.msra.gmra.mrb[4].mxu1 %vm594_vm0, %v2170_v53  ;;  %693 = vst.msk [vmem:[#allocation3 + $0x20] sm:$0xff] %vm688_vm1, %v2018_v60  ;;  %694 = vst.msk [vmem:[#allocation3 + $0x28] sm:$0xff] %vm688_vm1, %v2018_v60  ;;  %1842 = vmatpush3.bf16.msra.mxu0 %v1938_v58 }
  0x22   : > { %1837 = vmatprep.mubr.msk.bf16.mxu1 %vm594_vm0, %v2173_v57  ;;  %695 = vst.msk [vmem:[#allocation3 + $0x30] sm:$0xff] %vm688_vm1, %v2018_v60  ;;  %696 = vst.msk [vmem:[#allocation3 + $0x38] sm:$0xff] %vm688_vm1, %v2018_v60  ;;  %1843 = vmatprep.subr.bf16.mxu0 %v1939_v59 }
  0x25   : > { %1844 = vmatpush3.bf16.msra.mxu0 %v1939_v59 }
  0x28   : > { %1846 = vmatmul.mubr.msk.bf16.vlgmr.msra.gmra.mrb[4].mxu0 %vm594_vm0, %v2170_v53 }
  0x29   : > { %1838 = vmatmul.mubr.msk.bf16.gmra.mrb[8].mxu1 %vm594_vm0, %v2184_v61  ;;  %1849 = vmatprep.mubr.msk.bf16.mxu0 %vm594_vm0, %v2173_v57 }
  0x30   : > { %1850 = vmatmul.mubr.msk.bf16.gmra.mrb[8].mxu0 %vm594_vm0, %v2184_v61 }
  0xec   : > { %v1827_v63 = vpop.f32.mrb[0].mxu1 }
  0xed   : > { %v666_v0 = vadd.f32 %v1827_v63, %v1734_v62  ;;  %v657_v1 = vpop.f32.mrb[1].mxu1 }
  0xee   : > { %v658_v2 = vadd.f32 %v1734_v62, %v657_v1  ;;  %v1828_v3 = vpop.f32.mrb[2].mxu1 }
  0xef   : > { %v669_v4 = vadd.f32 %v1828_v3, %v1734_v62  ;;  %v660_v5 = vpop.f32.mrb[3].mxu1  ;;  %v678_v7 = vmul.f32 0.17677669, %v666_v0 }
  0xf0   : > { %v661_v6 = vadd.f32 %v1734_v62, %v660_v5  ;;  %v676_v9 = vmul.f32 0.17677669, %v658_v2 }
  0xf1   : > { %v679_v8 = vmul.f32 0.17677669, %v669_v4 }
  0xf2   : > { %v677_v10 = vmul.f32 0.17677669, %v661_v6  ;;  %v1823_v15 = vpop.f32.mrb[0].mxu0 }
  0xf3   : > { %v683_v11 = vpack.c.bf16 %v679_v8, %v678_v7  ;;  %v650_v17 = vadd.f32 %v1823_v15, %v1734_v62  ;;  %v641_v18 = vpop.f32.mrb[1].mxu0 }
  0xf4   : > { %v682_v12 = vpack.c.bf16 %v677_v10, %v676_v9  ;;  %v1835_v13 = vpop.f32.mrb[4].mxu1  ;;  %v642_v20 = vadd.f32 %v1734_v62, %v641_v18  ;;  %v1824_v21 = vpop.f32.mrb[2].mxu0 }
  0xf5   : > { %687 = vst.msk [vmem:[#allocation2 + $0x18] sm:$0xff] %vm594_vm0, %v683_v11  ;;  %v825_v16 = vpop.f32.mrb[5].mxu1  ;;  %v834_v22 = vadd.f32 %v1835_v13, %v1743_v14  ;;  %v674_v25 = vmul.f32 0.17677669, %v650_v17  ;;  %v653_v26 = vadd.f32 %v1824_v21, %v1734_v62  ;;  %v644_v27 = vpop.f32.mrb[3].mxu0  ;;  %v2019_v11 = vmov 0  }
  0xf6   : > { %686 = vst.msk [vmem:[#allocation2 + $0x10] sm:$0xff] %vm594_vm0, %v682_v12  ;;  %v1836_v19 = vpop.f32.mrb[6].mxu1  ;;  %v826_v28 = vadd.f32 %v1743_v14, %v825_v16  ;;  %v672_v30 = vmul.f32 0.17677669, %v642_v20  ;;  %v645_v31 = vadd.f32 %v1734_v62, %v644_v27  ;;  %1932 = vset.pattern.permute.xlu0 %v2019_v11  ;;  %1933 = vset.pattern.permute.xlu1 %v2019_v11  ;;  %v2020_v12 = vmov 0.0   ;;  %v2278_v13 = vld [vmem:[#allocation3 + $0x10] sm:$0xff] }
  0xf7   : > { %v837_v23 = vadd.f32 %v1836_v19, %v1743_v14  ;;  %v828_v24 = vpop.f32.mrb[7].mxu1  ;;  %v675_v33 = vmul.f32 0.17677669, %v653_v26  ;;  %697 = vst.msk [vmem:[#allocation4] sm:$0xff] %vm688_vm1, %v2020_v12  ;;  %698 = vst.msk [vmem:[#allocation4 + $0x8] sm:$0xff] %vm688_vm1, %v2020_v12  ;;  %v2288_v19 = vld [vmem:[#allocation3 + $0x18] sm:$0xff] }
  0xf8   : > { %v829_v29 = vadd.f32 %v1743_v14, %v828_v24  ;;  %v673_v35 = vmul.f32 0.17677669, %v645_v31  ;;  %699 = vst.msk [vmem:[#allocation4 + $0x10] sm:$0xff] %vm688_vm1, %v2020_v12  ;;  %700 = vst.msk [vmem:[#allocation4 + $0x18] sm:$0xff] %vm688_vm1, %v2020_v12  ;;  %v2295_v21 = vld [vmem:[#allocation3 + $0x8] sm:$0xff] }
  0xf9   : > { %v857_v32 = vpack.c.bf16 %v837_v23, %v834_v22  ;;  %v681_v36 = vpack.c.bf16 %v675_v33, %v674_v25  ;;  %701 = vst.msk [vmem:[#allocation4 + $0x20] sm:$0xff] %vm688_vm1, %v2020_v12  ;;  %702 = vst.msk [vmem:[#allocation4 + $0x28] sm:$0xff] %vm688_vm1, %v2020_v12  ;;  %v1750_v33 = vld [vmem:[%s2482_s9] ss:$0 sm:$0xff] }
  0xfa   : > { %v856_v34 = vpack.c.bf16 %v829_v29, %v826_v28  ;;  %v680_v39 = vpack.c.bf16 %v673_v35, %v672_v30  ;;  %703 = vst.msk [vmem:[#allocation4 + $0x30] sm:$0xff] %vm688_vm1, %v2020_v12  ;;  %704 = vst.msk [vmem:[#allocation4 + $0x38] sm:$0xff] %vm688_vm1, %v2020_v12  ;;  %v2313_v30 = vld [vmem:[#allocation3 + $0x20] sm:$0xff] }
  0xfb   : > { %685 = vst.msk [vmem:[#allocation2 + $0x8] sm:$0xff] %vm594_vm0, %v681_v36  ;;  %v972_v49 = vsel %vm594_vm0, %v857_v32, 0  ;;  %705 = vst.msk [vmem:[#allocation5] sm:$0xff] %vm594_vm0, %v2020_v12  ;;  %v1847_v26 = vpop.f32.mrb[4].mxu0  ;;  %v2322_v36 = vld [vmem:[#allocation3 + $0x28] sm:$0xff] }
  0xfc   : > { %1901 = vmatprep.subr.msk.bf16.mxu1 %vm594_vm0, %v856_v34  ;;  %v969_v37 = vsel %vm594_vm0, %v856_v34, 0  ;;  %v1839_v38 = vpop.f32.mrb[8].mxu1  ;;  %684 = vst.msk [vmem:[#allocation2] sm:$0xff] %vm594_vm0, %v680_v39  ;;  %v955_v56 = vld [vmem:[#allocation2 + $0x18] sm:$0xff]  ;;  %706 = vst.msk [vmem:[#allocation5 + $0x8] sm:$0xff] %vm594_vm0, %v2020_v12  ;;  %v917_v28 = vpop.f32.mrb[5].mxu0 }
  0xfd   : > { %1854 = vmatpush3.bf16.xpose.msra.mxu1 %v969_v37  ;;  %v850_v40 = vadd.f32 %v1839_v38, %v1743_v14  ;;  %v841_v41 = vpop.f32.mrb[9].mxu1  ;;  %v954_v55 = vld [vmem:[#allocation2 + $0x10] sm:$0xff]  ;;  %707 = vst.msk [vmem:[#allocation5 + $0x10] sm:$0xff] %vm594_vm0, %v2020_v12  ;;  %708 = vst.msk [vmem:[#allocation5 + $0x18] sm:$0xff] %vm594_vm0, %v2020_v12  ;;  %v1848_v31 = vpop.f32.mrb[6].mxu0  ;;  %v918_v37 = vadd.f32 %v1750_v33, %v917_v28 }
  0xfe   : > { %1902 = vmatprep.subr.msk.bf16.mxu1 %vm594_vm0, %v857_v32  ;;  %v842_v42 = vadd.f32 %v1743_v14, %v841_v41  ;;  %v1840_v43 = vpop.f32.mrb[10].mxu1  ;;  %709 = vst.msk [vmem:[#allocation5 + $0x20] sm:$0xff] %vm594_vm0, %v2020_v12  ;;  %710 = vst.msk [vmem:[#allocation5 + $0x28] sm:$0xff] %vm594_vm0, %v2020_v12  ;;  %v920_v34 = vpop.f32.mrb[7].mxu0  ;;  %v2328_v41 = vld [vmem:[#allocation3 + $0x30] sm:$0xff] }
  0xff   : > { %v853_v44 = vadd.f32 %v1840_v43, %v1743_v14  ;;  %v844_v45 = vpop.f32.mrb[11].mxu1  ;;  %711 = vst.msk [vmem:[#allocation5 + $0x30] sm:$0xff] %vm594_vm0, %v2020_v12  ;;  %712 = vst.msk [vmem:[#allocation5 + $0x38] sm:$0xff] %vm594_vm0, %v2020_v12  ;;  %v921_v38 = vadd.f32 %v1750_v33, %v920_v34 }
 0x100   : > { %v845_v46 = vadd.f32 %v1743_v14, %v844_v45  ;;  %v2280_v14 = vld [vmem:[#allocation3] sm:$0xff] }
 0x101   : > { %v859_v47 = vpack.c.bf16 %v853_v44, %v850_v40  ;;  %v948_v43 = vpack.c.bf16 %v921_v38, %v918_v37 }
 0x102   : > { %v858_v48 = vpack.c.bf16 %v845_v46, %v842_v42  ;;  %v953_v54 = vld [vmem:[#allocation2 + $0x8] sm:$0xff]  ;;  %v926_v42 = vadd.f32 %v1847_v26, %v1750_v33 }
 0x103   : > { %v952_v50 = vld [vmem:[#allocation2] sm:$0xff]  ;;  %v978_v52 = vsel %vm594_vm0, %v859_v47, 0  ;;  %1869 = vmatprep.subr.bf16.mxu0 %v948_v43 }
 0x104   : > { %1861 = vmatprep.mubr.msk.bf16.mxu1 %vm594_vm0, %v952_v50  ;;  %v975_v51 = vsel %vm594_vm0, %v858_v48, 0  ;;  %1870 = vmatpush3.bf16.msra.mxu0 %v948_v43 }
 0x105   : > { %1856 = vmatpush3.bf16.xpose.msra.mxu1 %v972_v49  ;;  %v1851_v49 = vpop.f32.mrb[8].mxu0 }
 0x106   : > { %1903 = vmatprep.subr.msk.bf16.mxu1 %vm594_vm0, %v858_v48  ;;  %v929_v48 = vadd.f32 %v1848_v31, %v1750_v33 }
 0x10d   : > { %1858 = vmatpush3.bf16.xpose.msra.mxu1 %v975_v51 }
 0x10e   : > { %1904 = vmatprep.subr.msk.bf16.mxu1 %vm594_vm0, %v859_v47  ;;  %v2337_v47 = vld [vmem:[#allocation3 + $0x38] sm:$0xff] }
 0x115   : > { %1860 = vmatpush3.bf16.xpose.msra.mxu1 %v978_v52  ;;  %v933_v52 = vpop.f32.mrb[9].mxu0 }
 0x11c   : > { %1862 = vmatmul.mubr.msk.bf16.vlgmr.msra.gmra.mrb[12].mxu1 %vm594_vm0, %v953_v54 }
 0x11d   : > { %1865 = vmatprep.mubr.msk.bf16.mxu1 %vm594_vm0, %v954_v55  ;;  %v949_v55 = vpack.c.bf16 %v929_v48, %v926_v42 }
 0x11f   : > { %1871 = vmatprep.subr.bf16.mxu0 %v949_v55 }
 0x120   : > { %1872 = vmatpush3.bf16.msra.mxu0 %v949_v55 }
 0x124   : > { %1866 = vmatmul.mubr.msk.bf16.gmra.mrb[16].mxu1 %vm594_vm0, %v955_v56  ;;  %v1852_v56 = vpop.f32.mrb[10].mxu0 }
 0x125   : > { %v936_v60 = vpop.f32.mrb[11].mxu0 }
 0x1ef   : > { %v2230_v62 = vpop.f32.mrb[12].mxu1 }
 0x1f0   : > { %v2232_v63 = vpop.f32.mrb[13].mxu1  ;;  %v1060_v0 = vsel %vm1053_vm2, %v2230_v62, -inf }
 0x1f1   : > { %1061 = vmax.xlane.f32.xlu1 %v1060_v0  ;;  %v2236_v1 = vpop.f32.mrb[14].mxu1  ;;  %v1054_v53 = vsel %vm1053_vm2, %v2232_v63, -inf  ;;  %v934_v0 = vadd.f32 %v1750_v33, %v933_v52 }
 0x1f2   : > { %1055 = vmax.xlane.f32.xlu0 %v1054_v53  ;;  %v2240_v2 = vpop.f32.mrb[15].mxu1  ;;  %v1063_v57 = vsel %vm1053_vm2, %v2236_v1, -inf  ;;  %v937_v53 = vadd.f32 %v1750_v33, %v936_v60 }
 0x1f3   : > { %v1057_v61 = vsel %vm1053_vm2, %v2240_v2, -inf }
 0x1f5   : > { %1064 = vmax.xlane.f32.xlu1 %v1063_v57 }
 0x1f6   : > { %1058 = vmax.xlane.f32.xlu0 %v1057_v61  ;;  %v950_v61 = vpack.c.bf16 %v937_v53, %v934_v0 }
 0x1f7   : > { %v2246_v3 = vpop.f32.mrb[16].mxu1 }
 0x1f8   : > { %v2248_v4 = vpop.f32.mrb[17].mxu1  ;;  %v1072_v9 = vsel %vm1053_vm2, %v2246_v3, -inf  ;;  %1873 = vmatprep.subr.bf16.mxu0 %v950_v61 }
 0x1f9   : > { %v2250_v5 = vpop.f32.mrb[18].mxu1  ;;  %v1066_v6 = vsel %vm1053_vm2, %v2248_v4, -inf  ;;  %1874 = vmatpush3.bf16.msra.mxu0 %v950_v61 }
 0x1fa   : > { %1067 = vmax.xlane.f32.xlu0 %v1066_v6  ;;  %v2254_v7 = vpop.f32.mrb[19].mxu1  ;;  %v1075_v10 = vsel %vm1053_vm2, %v2250_v5, -inf  ;;  %v942_v6 = vadd.f32 %v1851_v49, %v1750_v33 }
 0x1fb   : > { %v1069_v8 = vsel %vm1053_vm2, %v2254_v7, -inf }
 0x1fc   : > { %1070 = vmax.xlane.f32.xlu1 %v1069_v8  ;;  %v945_v8 = vadd.f32 %v1852_v56, %v1750_v33 }
 0x1fe   : > { %1073 = vmax.xlane.f32.xlu0 %v1072_v9  ;;  %v951_v9 = vpack.c.bf16 %v945_v8, %v942_v6 }
 0x200   : > { %1076 = vmax.xlane.f32.xlu1 %v1075_v10  ;;  %1875 = vmatprep.subr.bf16.mxu0 %v951_v9 }
 0x201   : > { %1876 = vmatpush3.bf16.msra.mxu0 %v951_v9 }
 0x27e   : > { %v1062_v15 = vpop.xlane.xlu1 %1061 }
 0x27f   : > { %v2283_v16 = vmax.f32 %v2278_v13, %v1062_v15  ;;  %v1056_v17 = vpop.xlane.xlu0 %1055 }
 0x280   : > { %v2286_v18 = vmax.f32 %v2280_v14, %v1056_v17 }
 0x281   : > { %v1088_v20 = vsub.f32 %v2278_v13, %v2283_v16  ;;  %1386 = vst.msk [vmem:[#allocation3 + $0x10] sm:$0xff] %vm688_vm1, %v2283_v16  ;;  %1122 = vperm.xlu1 %1933, %v2283_v16  }
 0x282   : > { %v1086_v22 = vsub.f32 %v2280_v14, %v2286_v18  ;;  %1384 = vst.msk [vmem:[#allocation3] sm:$0xff] %vm688_vm1, %v2286_v18  ;;  %v1065_v23 = vpop.xlane.xlu1 %1064  ;;  %1112 = vperm.xlu0 %1932, %v2286_v18  }
 0x283   : > { %v2303_v24 = vmax.f32 %v2288_v19, %v1065_v23  ;;  %v1059_v25 = vpop.xlane.xlu0 %1058 }
 0x284   : > { %v2306_v27 = vmax.f32 %v2295_v21, %v1059_v25 }
 0x285   : > { %v1089_v29 = vsub.f32 %v2288_v19, %v2303_v24  ;;  %1387 = vst.msk [vmem:[#allocation3 + $0x18] sm:$0xff] %vm688_vm1, %v2303_v24  ;;  %1127 = vperm.xlu1 %1933, %v2303_v24  }
 0x286   : > { %v1087_v32 = vsub.f32 %v2295_v21, %v2306_v27  ;;  %1385 = vst.msk [vmem:[#allocation3 + $0x8] sm:$0xff] %vm688_vm1, %v2306_v27 }
 0x287   : > { %v1068_v35 = vpop.xlane.xlu0 %1067 }
 0x288   : > { %v2325_v39 = vmax.f32 %v2313_v30, %v1068_v35 }
 0x289   : > { %1117 = vperm.xlu1 %1933, %v2306_v27   ;;  %v1071_v40 = vpop.xlane.xlu1 %1070 }
 0x28a   : > { %v1090_v44 = vsub.f32 %v2313_v30, %v2325_v39  ;;  %1388 = vst.msk [vmem:[#allocation3 + $0x20] sm:$0xff] %vm688_vm1, %v2325_v39  ;;  %v2335_v45 = vmax.f32 %v2322_v36, %v1071_v40 }
 0x28b   : > { %v1074_v46 = vpop.xlane.xlu0 %1073 }
 0x28c   : > { %v1091_v50 = vsub.f32 %v2322_v36, %v2335_v45  ;;  %1389 = vst.msk [vmem:[#allocation3 + $0x28] sm:$0xff] %vm688_vm1, %v2335_v45  ;;  %v2344_v51 = vmax.f32 %v2328_v41, %v1074_v46  ;;  %v1102_v21 = vmul.f32 1.442695, %v1090_v44 }
 0x28d   : > { %v1077_v54 = vpop.xlane.xlu1 %1076 }
 0x28e   : > { %v1092_v58 = vsub.f32 %v2328_v41, %v2344_v51  ;;  %1390 = vst.msk [vmem:[#allocation3 + $0x30] sm:$0xff] %vm688_vm1, %v2344_v51  ;;  %v2351_v59 = vmax.f32 %v2337_v47, %v1077_v54  ;;  %1142 = vperm.xlu1 %1933, %v2344_v51   ;;  %v1104_v14 = vmul.f32 1.442695, %v1091_v50  ;;  %v1177_v41 = vld [vmem:[#allocation4 + $0x18] sm:$0xff] }
 0x290   : > { %v1093_v57 = vsub.f32 %v2337_v47, %v2351_v59  ;;  %1391 = vst.msk [vmem:[#allocation3 + $0x38] sm:$0xff] %vm688_vm1, %v2351_v59  ;;  %v1106_v13 = vmul.f32 1.442695, %v1092_v58  ;;  %v1175_v47 = vld [vmem:[#allocation4 + $0x8] sm:$0xff] }
 0x292   : > { %1132 = vperm.xlu1 %1933, %v2325_v39   ;;  %v1108_v16 = vmul.f32 1.442695, %v1093_v57  ;;  %v1176_v57 = vld [vmem:[#allocation4 + $0x10] sm:$0xff] }
 0x296   : > { %1137 = vperm.xlu1 %1933, %v2335_v45  }
 0x29a   : > { %1147 = vperm.xlu1 %1933, %v2351_v59  }
 0x300   : > { %v1123_v10 = vpop.permute.xlu1 %1122 }
 0x301   : > { %v1152_v11 = vsub.f32 %v2230_v62, %v1123_v10  ;;  %v1113_v12 = vpop.permute.xlu0 %1112 }
 0x302   : > { %v1150_v15 = vsub.f32 %v2232_v63, %v1113_v12 }
 0x303   : > { %v1162_v17 = vmul.f32 1.442695, %v1152_v11 }
 0x304   : > { %v1158_v23 = vmul.f32 1.442695, %v1150_v15  ;;  %v1128_v25 = vpop.permute.xlu1 %1127 }
 0x305   : > { %v1153_v26 = vsub.f32 %v2236_v1, %v1128_v25  ;;  %v1098_v25 = vmul.f32 1.442695, %v1088_v20 }
 0x306   : > { %1942 = vpow2.f32 %v1158_v23  ;;  %v1094_v23 = vmul.f32 1.442695, %v1086_v22 }
 0x307   : > { %v1164_v28 = vmul.f32 1.442695, %v1153_v26  ;;  %1944 = vpow2.f32 %v1162_v17  ;;  %v1096_v17 = vmul.f32 1.442695, %v1087_v32  ;;  %v1100_v26 = vmul.f32 1.442695, %v1089_v29 }
 0x308   : > { %v1118_v31 = vpop.permute.xlu1 %1117  ;;  %v1174_v32 = vld [vmem:[#allocation4] sm:$0xff] }
 0x309   : > { %1946 = vpow2.f32 %v1164_v28  ;;  %v1151_v33 = vsub.f32 %v2240_v2, %v1118_v31 }
 0x30b   : > { %v1160_v34 = vmul.f32 1.442695, %v1151_v33 }
 0x30d   : > { %1948 = vpow2.f32 %v1160_v34  ;;  %v1143_v35 = vpop.permute.xlu1 %1142 }
 0x30e   : > { %v1156_v62 = vsub.f32 %v2246_v3, %v1143_v35 }
 0x310   : > { %v1943_v37 = vpop.eup %1942  ;;  %v1170_v46 = vmul.f32 1.442695, %v1156_v62 }
 0x311   : > { %v1133_v38 = vpop.permute.xlu1 %1132  ;;  %v1190_v63 = vsel %vm1053_vm2, %v1943_v37, 0.0  ;;  %v1945_v40 = vpop.eup %1944 }
 0x312   : > { %v1154_v42 = vsub.f32 %v2248_v4, %v1133_v38  ;;  %1191 = vadd.xlane.f32.xlu1 %v1190_v63  ;;  %v1196_v53 = vsel %vm1053_vm2, %v1945_v40, 0.0  ;;  %v1180_v63 = vld [vmem:[#allocation4 + $0x30] sm:$0xff] }
 0x313   : > { %v1947_v1 = vpop.eup %1946 }
 0x314   : > { %v1288_v43 = vpack.c.bf16 %v1947_v1, %v1945_v40  ;;  %v1166_v48 = vmul.f32 1.442695, %v1154_v42  ;;  %v1199_v49 = vsel %vm1053_vm2, %v1947_v1, 0.0  ;;  %v1179_v40 = vld [vmem:[#allocation4 + $0x28] sm:$0xff] }
 0x315   : > { %v1138_v2 = vpop.permute.xlu1 %1137 }
 0x316   : > { %1950 = vpow2.f32 %v1166_v48  ;;  %v1155_v52 = vsub.f32 %v2254_v7, %v1138_v2  ;;  %1200 = vadd.xlane.f32.xlu1 %v1199_v49 }
 0x317   : > { %v1949_v54 = vpop.eup %1948  ;;  %1952 = vpow2.f32 %v1170_v46 }
 0x318   : > { %v1168_v3 = vmul.f32 1.442695, %v1155_v52  ;;  %v1193_v55 = vsel %vm1053_vm2, %v1949_v54, 0.0  ;;  %v1287_v56 = vpack.c.bf16 %v1949_v54, %v1943_v37  ;;  %v1178_v37 = vld [vmem:[#allocation4 + $0x20] sm:$0xff]  ;;  %v1181_v52 = vld [vmem:[#allocation4 + $0x38] sm:$0xff] }
 0x319   : > { %1194 = vadd.xlane.f32.xlu0 %v1193_v55  ;;  %v1148_v4 = vpop.permute.xlu1 %1147 }
 0x31a   : > { %1954 = vpow2.f32 %v1168_v3  ;;  %v1157_v60 = vsub.f32 %v2250_v5, %v1148_v4  ;;  %1877 = vmatprep.mubr.msk.bf16.mxu0 %vm1053_vm2, %v1287_v56  ;;  %v1940_v4 = vld [vmem:[%s2483_s10] sm:$0xff]  }
 0x31b   : > { %1878 = vmatmul.mubr.msk.bf16.vlgmr.msra.gmra.mrb[12].mxu0 %vm1053_vm2, %v1288_v43  ;;  %1885 = vmatprep.subr.bf16.mxu0 %v1940_v4 }
 0x31c   : > { %v1172_v0 = vmul.f32 1.442695, %v1157_v60  ;;  %1886 = vmatpush3.bf16.msra.mxu0 %v1940_v4 }
 0x31d   : > { %1197 = vadd.xlane.f32.xlu0 %v1196_v53 }
 0x31e   : > { %1956 = vpow2.f32 %v1172_v0 }
 0x31f   : > { %1958 = vpow2.f32 %v1096_v17 }
 0x320   : > { %v1951_v7 = vpop.eup %1950  ;;  %1960 = vpow2.f32 %v1094_v23 }
 0x321   : > { %v1202_v61 = vsel %vm1053_vm2, %v1951_v7, 0.0  ;;  %v1953_v6 = vpop.eup %1952  ;;  %1962 = vpow2.f32 %v1098_v25 }
 0x322   : > { %1203 = vadd.xlane.f32.xlu0 %v1202_v61  ;;  %v1208_v9 = vsel %vm1053_vm2, %v1953_v6, 0.0  ;;  %1964 = vpow2.f32 %v1100_v26 }
 0x323   : > { %1966 = vpow2.f32 %v1102_v21  ;;  %v1233_v21 = vld [vmem:[#allocation5 + $0x10] sm:$0xff] }
 0x324   : > { %v1955_v8 = vpop.eup %1954  ;;  %1968 = vpow2.f32 %v1104_v14 }
 0x325   : > { %v1205_v10 = vsel %vm1053_vm2, %v1955_v8, 0.0  ;;  %v1289_v5 = vpack.c.bf16 %v1955_v8, %v1951_v7  ;;  %1970 = vpow2.f32 %v1106_v13  ;;  %v1231_v13 = vld [vmem:[#allocation5] sm:$0xff] }
 0x326   : > { %1209 = vadd.xlane.f32.xlu0 %v1208_v9  ;;  %1206 = vadd.xlane.f32.xlu1 %v1205_v10  ;;  %1972 = vpow2.f32 %v1108_v16  ;;  %v1234_v16 = vld [vmem:[#allocation5 + $0x18] sm:$0xff] }
 0x327   : > { %1881 = vmatprep.mubr.msk.bf16.mxu0 %vm1053_vm2, %v1289_v5  ;;  %v1941_v5 = vld [vmem:[%s2483_s10 + $0x8] sm:$0xff]  }
 0x328   : > { %v1957_v11 = vpop.eup %1956  ;;  %1887 = vmatprep.subr.bf16.mxu0 %v1941_v5 }
 0x329   : > { %v1211_v12 = vsel %vm1053_vm2, %v1957_v11, 0.0  ;;  %v1290_v15 = vpack.c.bf16 %v1957_v11, %v1953_v6  ;;  %v1959_v18 = vpop.eup %1958  ;;  %1888 = vmatpush3.bf16.msra.mxu0 %v1941_v5 }
 0x32a   : > { %1212 = vadd.xlane.f32.xlu1 %v1211_v12  ;;  %v1961_v19 = vpop.eup %1960  ;;  %v1183_v58 = vmul.f32 %v1959_v18, %v1175_v47 }
 0x32b   : > { %1882 = vmatmul.mubr.msk.bf16.gmra.mrb[16].mxu0 %vm1053_vm2, %v1290_v15  ;;  %v1963_v20 = vpop.eup %1962  ;;  %v1182_v36 = vmul.f32 %v1961_v19, %v1174_v32 }
 0x32c   : > { %v1965_v22 = vpop.eup %1964  ;;  %v1184_v31 = vmul.f32 %v1963_v20, %v1176_v57  ;;  %v1238_v57 = vld [vmem:[#allocation5 + $0x38] sm:$0xff] }
 0x32d   : > { %v1967_v24 = vpop.eup %1966  ;;  %v1185_v45 = vmul.f32 %v1965_v22, %v1177_v41 }
 0x32e   : > { %v1969_v27 = vpop.eup %1968  ;;  %v1186_v62 = vmul.f32 %v1967_v24, %v1178_v37 }
 0x32f   : > { %v1971_v29 = vpop.eup %1970  ;;  %v1187_v48 = vmul.f32 %v1969_v27, %v1179_v40 }
 0x330   : > { %v1973_v30 = vpop.eup %1972  ;;  %v1188_v46 = vmul.f32 %v1971_v29, %v1180_v63 }
 0x331   : > { %v1189_v60 = vmul.f32 %v1973_v30, %v1181_v52 }
 0x33b   : > { %1246 = vperm.xlu1 %1933, %v1959_v18  }
 0x33c   : > { %1241 = vperm.xlu0 %1932, %v1961_v19   ;;  %v1232_v19 = vld [vmem:[#allocation5 + $0x8] sm:$0xff] }
 0x33f   : > { %1251 = vperm.xlu1 %1933, %v1963_v20  }
 0x340   : > { %1256 = vperm.xlu0 %1932, %v1965_v22  }
 0x343   : > { %1261 = vperm.xlu1 %1933, %v1967_v24  }
 0x344   : > { %1266 = vperm.xlu0 %1932, %v1969_v27  }
 0x347   : > { %1271 = vperm.xlu1 %1933, %v1971_v29  }
 0x348   : > { %1276 = vperm.xlu0 %1932, %v1973_v30  }
 0x39f   : > { %v1192_v39 = vpop.xlane.xlu1 %1191 }
 0x3a0   : > { %v1214_v44 = vadd.f32 %v1192_v39, %v1182_v36 }
 0x3a2   : > { %1223 = vst.msk [vmem:[#allocation4] sm:$0xff] %vm688_vm1, %v1214_v44 }
 0x3a3   : > { %v1201_v50 = vpop.xlane.xlu1 %1200 }
 0x3a4   : > { %v1217_v51 = vadd.f32 %v1201_v50, %v1185_v45 }
 0x3a6   : > { %1226 = vst.msk [vmem:[#allocation4 + $0x18] sm:$0xff] %vm688_vm1, %v1217_v51  ;;  %v1195_v59 = vpop.xlane.xlu0 %1194  ;;  %v1237_v51 = vld [vmem:[#allocation5 + $0x30] sm:$0xff] }
 0x3a7   : > { %v1215_v28 = vadd.f32 %v1195_v59, %v1183_v58  ;;  %v1235_v59 = vld [vmem:[#allocation5 + $0x20] sm:$0xff] }
 0x3a9   : > { %1224 = vst.msk [vmem:[#allocation4 + $0x8] sm:$0xff] %vm688_vm1, %v1215_v28  ;;  %v1403_v33 = vld [vmem:[#allocation4] sm:$0xff] }
 0x3aa   : > { %v1198_v34 = vpop.xlane.xlu0 %1197  ;;  %1974 = vrcp.f32 %v1403_v33 }
 0x3ab   : > { %v1216_v35 = vadd.f32 %v1198_v34, %v1184_v31  ;;  %v1236_v31 = vld [vmem:[#allocation5 + $0x28] sm:$0xff] }
 0x3ad   : > { %1225 = vst.msk [vmem:[#allocation4 + $0x10] sm:$0xff] %vm688_vm1, %v1216_v35  ;;  %v1406_v43 = vld [vmem:[#allocation4 + $0x18] sm:$0xff] }
 0x3af   : > { %v1204_v38 = vpop.xlane.xlu0 %1203 }
 0x3b0   : > { %v1218_v42 = vadd.f32 %v1204_v38, %v1186_v62  ;;  %v1404_v1 = vld [vmem:[#allocation4 + $0x8] sm:$0xff] }
 0x3b1   : > { %1976 = vrcp.f32 %v1404_v1 }
 0x3b2   : > { %1227 = vst.msk [vmem:[#allocation4 + $0x20] sm:$0xff] %vm688_vm1, %v1218_v42  ;;  %1978 = vrcp.f32 %v1406_v43 }
 0x3b3   : > { %v1210_v49 = vpop.xlane.xlu0 %1209  ;;  %v1207_v2 = vpop.xlane.xlu1 %1206 }
 0x3b4   : > { %v1975_v54 = vpop.eup %1974  ;;  %v1220_v3 = vadd.f32 %v1210_v49, %v1188_v46  ;;  %v1219_v55 = vadd.f32 %v1207_v2, %v1187_v48  ;;  %v1405_v56 = vld [vmem:[#allocation4 + $0x10] sm:$0xff] }
 0x3b5   : > { %1421 = vperm.xlu1 %1933, %v1975_v54   ;;  %1980 = vrcp.f32 %v1405_v56 }
 0x3b6   : > { %1229 = vst.msk [vmem:[#allocation4 + $0x30] sm:$0xff] %vm688_vm1, %v1220_v3  ;;  %1228 = vst.msk [vmem:[#allocation4 + $0x28] sm:$0xff] %vm688_vm1, %v1219_v55 }
 0x3b7   : > { %v1213_v0 = vpop.xlane.xlu1 %1212 }
 0x3b8   : > { %v1221_v53 = vadd.f32 %v1213_v0, %v1189_v60 }
 0x3b9   : > { %v1407_v7 = vld [vmem:[#allocation4 + $0x20] sm:$0xff] }
 0x3ba   : > { %1230 = vst.msk [vmem:[#allocation4 + $0x38] sm:$0xff] %vm688_vm1, %v1221_v53  ;;  %1982 = vrcp.f32 %v1407_v7 }
 0x3bb   : > { %v1977_v61 = vpop.eup %1976  ;;  %v1247_v25 = vpop.permute.xlu1 %1246 }
 0x3bc   : > { %1426 = vperm.xlu0 %1932, %v1977_v61   ;;  %v1979_v9 = vpop.eup %1978  ;;  %v1242_v26 = vpop.permute.xlu0 %1241  ;;  %v1280_v32 = vmul.f32 %v1247_v25, %v1232_v19 }
 0x3bd   : > { %v1409_v6 = vld [vmem:[#allocation4 + $0x30] sm:$0xff]  ;;  %v1408_v8 = vld [vmem:[#allocation4 + $0x28] sm:$0xff]  ;;  %v1279_v22 = vmul.f32 %v1242_v26, %v1231_v13  ;;  %v1765_v13 = vld [vmem:[%s2484_s11] ss:$0 sm:$0xff] }
 0x3be   : > { %1984 = vrcp.f32 %v1409_v6 }
 0x3bf   : > { %v1981_v10 = vpop.eup %1980  ;;  %1986 = vrcp.f32 %v1408_v8  ;;  %v1252_v14 = vpop.permute.xlu1 %1251 }
 0x3c0   : > { %1431 = vperm.xlu1 %1933, %v1981_v10   ;;  %1436 = vperm.xlu0 %1932, %v1979_v9   ;;  %v1257_v18 = vpop.permute.xlu0 %1256  ;;  %v1281_v20 = vmul.f32 %v1252_v14, %v1233_v21 }
 0x3c1   : > { %v1410_v11 = vld [vmem:[#allocation4 + $0x38] sm:$0xff]  ;;  %v1282_v27 = vmul.f32 %v1257_v18, %v1234_v16 }
 0x3c2   : > { %1988 = vrcp.f32 %v1410_v11 }
 0x3c3   : > { %v1262_v47 = vpop.permute.xlu1 %1261 }
 0x3c4   : > { %v1983_v12 = vpop.eup %1982  ;;  %v1267_v50 = vpop.permute.xlu0 %1266  ;;  %v1283_v34 = vmul.f32 %v1262_v47, %v1235_v59 }
 0x3c5   : > { %1441 = vperm.xlu1 %1933, %v1983_v12   ;;  %v1284_v63 = vmul.f32 %v1267_v50, %v1236_v31 }
 0x3c7   : > { %v1272_v58 = vpop.permute.xlu1 %1271 }
 0x3c8   : > { %v1985_v15 = vpop.eup %1984  ;;  %v1277_v28 = vpop.permute.xlu0 %1276  ;;  %v1285_v33 = vmul.f32 %v1272_v58, %v1237_v51  ;;  %v1577_v51 = vld [vmem:[%s2122_s19 + $0x30] sm:$0xff] }
 0x3c9   : > { %v1987_v17 = vpop.eup %1986  ;;  %1451 = vperm.xlu1 %1933, %v1985_v15   ;;  %v1286_v37 = vmul.f32 %v1277_v28, %v1238_v57  ;;  %v1575_v57 = vld [vmem:[%s2122_s19 + $0x20] sm:$0xff] }
 0x3ca   : > { %1446 = vperm.xlu0 %1932, %v1987_v17  }
 0x3cc   : > { %v1989_v23 = vpop.eup %1988 }
 0x3ce   : > { %1456 = vperm.xlu0 %1932, %v1989_v23  }
 0x3ee   : > { %v1879_v24 = vpop.f32.mrb[12].mxu0 }
 0x3ef   : > { %v1370_v29 = vadd.f32 %v1879_v24, %v1281_v20  ;;  %v1337_v30 = vpop.f32.mrb[13].mxu0  ;;  %v1990_v24 = vld [vmem:[%s2122_s19 + $0x10] sm:$0xff] }
 0x3f0   : > { %v1368_v36 = vadd.f32 %v1337_v30, %v1279_v22  ;;  %v1880_v39 = vpop.f32.mrb[14].mxu0 }
 0x3f1   : > { %1378 = vst.msk [vmem:[#allocation5 + $0x10] sm:$0xff] %vm594_vm0, %v1370_v29  ;;  %v1371_v41 = vadd.f32 %v1880_v39, %v1282_v27  ;;  %v1340_v44 = vpop.f32.mrb[15].mxu0 }
 0x3f2   : > { %1376 = vst.msk [vmem:[#allocation5] sm:$0xff] %vm594_vm0, %v1368_v36  ;;  %v1369_v45 = vadd.f32 %v1340_v44, %v1280_v32  ;;  %v1991_v32 = vld [vmem:[%s2122_s19] sm:$0xff] }
 0x3f3   : > { %1379 = vst.msk [vmem:[#allocation5 + $0x18] sm:$0xff] %vm594_vm0, %v1371_v41  ;;  %v1992_v41 = vld [vmem:[%s2122_s19 + $0x18] sm:$0xff] }
 0x3f4   : > { %1377 = vst.msk [vmem:[#allocation5 + $0x8] sm:$0xff] %vm594_vm0, %v1369_v45  ;;  %v1993_v45 = vld [vmem:[%s2122_s19 + $0x8] sm:$0xff] }
 0x3f8   : > { %v1397_v60 = vld [vmem:[#allocation5 + $0x10] sm:$0xff] }
 0x3f9   : > { %v1395_v49 = vld [vmem:[#allocation5] sm:$0xff] }
 0x3fa   : > { %v1398_v56 = vld [vmem:[#allocation5 + $0x18] sm:$0xff] }
 0x3fb   : > { %v1396_v52 = vld [vmem:[#allocation5 + $0x8] sm:$0xff] }
 0x3fe   : > { %v1883_v35 = vpop.f32.mrb[16].mxu0 }
 0x3ff   : > { %v1374_v62 = vadd.f32 %v1883_v35, %v1285_v33  ;;  %v1353_v38 = vpop.f32.mrb[17].mxu0  ;;  %v1578_v33 = vld [vmem:[%s2122_s19 + $0x38] sm:$0xff] }
 0x400   : > { %v1372_v40 = vadd.f32 %v1353_v38, %v1283_v34  ;;  %v1884_v42 = vpop.f32.mrb[18].mxu0 }
 0x401   : > { %1382 = vst.msk [vmem:[#allocation5 + $0x30] sm:$0xff] %vm594_vm0, %v1374_v62  ;;  %v1375_v1 = vadd.f32 %v1884_v42, %v1286_v37  ;;  %v1356_v43 = vpop.f32.mrb[19].mxu0  ;;  %v1576_v62 = vld [vmem:[%s2122_s19 + $0x28] sm:$0xff] }
 0x402   : > { %1380 = vst.msk [vmem:[#allocation5 + $0x20] sm:$0xff] %vm594_vm0, %v1372_v40  ;;  %v1373_v46 = vadd.f32 %v1356_v43, %v1284_v63 }
 0x403   : > { %1383 = vst.msk [vmem:[#allocation5 + $0x38] sm:$0xff] %vm594_vm0, %v1375_v1 }
 0x404   : > { %1381 = vst.msk [vmem:[#allocation5 + $0x28] sm:$0xff] %vm594_vm0, %v1373_v46 }
 0x408   : > { %v1401_v17 = vld [vmem:[#allocation5 + $0x30] sm:$0xff] }
 0x409   : > { %v1399_v8 = vld [vmem:[#allocation5 + $0x20] sm:$0xff] }
 0x40a   : > { %v1402_v23 = vld [vmem:[#allocation5 + $0x38] sm:$0xff] }
 0x40b   : > { %v1400_v9 = vld [vmem:[#allocation5 + $0x28] sm:$0xff] }
 0x434   : > { %v1422_v48 = vpop.permute.xlu1 %1421 }
 0x435   : > { %v1459_v54 = vmul.f32 %v1422_v48, %v1395_v49 }
 0x43b   : > { %v1427_v2 = vpop.permute.xlu0 %1426 }
 0x43c   : > { %v1460_v3 = vmul.f32 %v1427_v2, %v1396_v52 }
 0x43e   : > { %v1467_v55 = vpack.c.bf16 %v1460_v3, %v1459_v54 }
 0x43f   : > { %v1437_v4 = vpop.permute.xlu0 %1436  ;;  %v1432_v0 = vpop.permute.xlu1 %1431 }
 0x440   : > { %v1462_v53 = vmul.f32 %v1437_v4, %v1398_v56  ;;  %v1461_v7 = vmul.f32 %v1432_v0, %v1397_v60  ;;  %1889 = vmatprep.mubr.msk.bf16.mxu0 %vm594_vm0, %v1467_v55 }
 0x442   : > { %v1468_v61 = vpack.c.bf16 %v1462_v53, %v1461_v7 }
 0x444   : > { %1890 = vmatmul.mubr.msk.bf16.vlgmr.msra.gmra.mrb[20].mxu0 %vm594_vm0, %v1468_v61  ;;  %v1442_v6 = vpop.permute.xlu1 %1441 }
 0x445   : > { %v1463_v5 = vmul.f32 %v1442_v6, %v1399_v8 }
 0x448   : > { %v1452_v12 = vpop.permute.xlu1 %1451 }
 0x449   : > { %v1447_v10 = vpop.permute.xlu0 %1446  ;;  %v1465_v26 = vmul.f32 %v1452_v12, %v1401_v17 }
 0x44a   : > { %v1464_v11 = vmul.f32 %v1447_v10, %v1400_v9 }
 0x44c   : > { %v1469_v15 = vpack.c.bf16 %v1464_v11, %v1463_v5 }
 0x44d   : > { %v1457_v25 = vpop.permute.xlu0 %1456 }
 0x44e   : > { %v1466_v21 = vmul.f32 %v1457_v25, %v1402_v23  ;;  %1893 = vmatprep.mubr.msk.bf16.mxu0 %vm594_vm0, %v1469_v15 }
 0x450   : > { %v1470_v14 = vpack.c.bf16 %v1466_v21, %v1465_v26 }
 0x452   : > { %1894 = vmatmul.mubr.msk.bf16.gmra.mrb[24].mxu0 %vm594_vm0, %v1470_v14 }
 0x517   : > { %v1891_v16 = vpop.f32.mrb[20].mxu0 }
 0x518   : > { %v1549_v18 = vadd.f32 %v1891_v16, %v1765_v13  ;;  %v1540_v19 = vpop.f32.mrb[21].mxu0 }
 0x519   : > { %v1541_v20 = vadd.f32 %v1765_v13, %v1540_v19  ;;  %v1892_v22 = vpop.f32.mrb[22].mxu0 }
 0x51a   : > { %v1581_v27 = vadd.f32 %v1990_v24, %v1549_v18  ;;  %v1552_v29 = vadd.f32 %v1892_v22, %v1765_v13  ;;  %v1543_v30 = vpop.f32.mrb[23].mxu0 }
 0x51b   : > { %v1579_v36 = vadd.f32 %v1991_v32, %v1541_v20  ;;  %v1544_v39 = vadd.f32 %v1765_v13, %v1543_v30 }
 0x51c   : > { %1589 = vst.msk [vmem:[%s2438_s20 + $0x10] sm:$0xff] %vm594_vm0, %v1581_v27  ;;  %v1582_v44 = vadd.f32 %v1992_v41, %v1552_v29 }
 0x51d   : > { %1587 = vst.msk [vmem:[%s2438_s20] sm:$0xff] %vm594_vm0, %v1579_v36  ;;  %v1580_v47 = vadd.f32 %v1993_v45, %v1544_v39 }
 0x51e   : > { %1590 = vst.msk [vmem:[%s2438_s20 + $0x18] sm:$0xff] %vm594_vm0, %v1582_v44 }
 0x51f   : > { %1588 = vst.msk [vmem:[%s2438_s20 + $0x8] sm:$0xff] %vm594_vm0, %v1580_v47 }
 0x525   : > { %v1895_v50 = vpop.f32.mrb[24].mxu0 }
 0x526   : > { %v1565_v58 = vadd.f32 %v1895_v50, %v1765_v13  ;;  %v1556_v59 = vpop.f32.mrb[25].mxu0 }
 0x527   : > { %v1557_v28 = vadd.f32 %v1765_v13, %v1556_v59  ;;  %v1896_v31 = vpop.f32.mrb[26].mxu0 }
 0x528   : > { %v1585_v34 = vadd.f32 %v1577_v51, %v1565_v58  ;;  %v1568_v35 = vadd.f32 %v1896_v31, %v1765_v13  ;;  %v1559_v37 = vpop.f32.mrb[27].mxu0 }
 0x529   : > { %v1583_v38 = vadd.f32 %v1575_v57, %v1557_v28  ;;  %v1560_v63 = vadd.f32 %v1765_v13, %v1559_v37 }
 0x52a   : > { %1593 = vst.msk [vmem:[%s2438_s20 + $0x30] sm:$0xff] %vm594_vm0, %v1585_v34  ;;  %v1586_v40 = vadd.f32 %v1578_v33, %v1568_v35 }
 0x52b   : > { %1591 = vst.msk [vmem:[%s2438_s20 + $0x20] sm:$0xff] %vm594_vm0, %v1583_v38  ;;  %v1584_v42 = vadd.f32 %v1576_v62, %v1560_v63 }
 0x52c   : > { %1594 = vst.msk [vmem:[%s2438_s20 + $0x38] sm:$0xff] %vm594_vm0, %v1586_v40 }
 0x52d   : > { %1592 = vst.msk [vmem:[%s2438_s20 + $0x28] sm:$0xff] %vm594_vm0, %v1584_v42 }
 0x52e PF: > { %s22_s23 = sadd.s32 1, %s2016_s23   ;;  %s2486_s21 = smov %s2012_s22 }
 0x52f   : > { %p19_p5 = scmp.ge.s32.totalorder %s22_s23, 4   ;;  %s2487_s22 = smov %s2489_s24 }
 0x531   :  { %21 = sbr.rel (!%p19_p5) target bundleno = 2 (0x2), region = 115 }

</bundles_post_ra>
